<compile_context>
chip_gen: v6e
topology: v6e:2x2x1
jax: 0.10.0
libtpu: 0.0.40
codegen_flags: <defaults>
</compile_context>

<pallas_src>
import functools

import jax
import jax.numpy as jnp
import numpy as np
from jax import lax
from jax.experimental import pallas as pl
from jax.experimental.pallas import tpu as pltpu


def _round_up(x, m):
    return ((x + m - 1) // m) * m


# ----------------------------------------------------------------------------
# Pallas kernel: one (batch, pixel-tile) grid step of the ARM forward.
# ----------------------------------------------------------------------------
def _arm_kernel(xm_ref,    # (1, Cin, Lt)       bf16  main pixel chunk
                xh_ref,    # (1, Cin, Lh)       bf16  halo chunk (next Lh pixels)
                w1_ref,    # (9, Cout, Cin)     bf16  3x3 weights (BN1 scale folded)
                b1_ref,    # (Cout, 1)          f32   BN1 shift
                w2_ref,    # (Cout, Cout)       f32   1x1 weights (BN2 scale folded)
                b2_ref,    # (Cout, 1)          f32   BN2 shift
                mask_ref,  # (1, Lt)            f32   1.0 on valid pixels
                out_ref,   # (1, Cout, Ltotal)  bf16  resident across the t axis
                xbuf_ref,  # (Cin, Lt + Lh)     bf16  scratch: main + halo stitched
                acc_ref,   # (Cout, Lt)         f32   scratch: conv accumulator
                pool_ref,  # (Cout, 1)          f32   scratch: pooled sum
                *, offsets, lt, inv_hw):
    t = pl.program_id(1)

    @pl.when(t == 0)
    def _():
        pool_ref[...] = jnp.zeros_like(pool_ref)

    # Stitch the contiguous window [t*Lt, t*Lt + Lt + Lh) of the flattened,
    # zero-padded image (main tile + halo) into VMEM scratch.
    xbuf_ref[:, :lt] = xm_ref[0]
    xbuf_ref[:, lt:] = xh_ref[0]

    # 3x3 conv == 9 shifted-window (Cout,Cin)x(Cin,Lt) matmuls, f32 VMEM acc
    # (static unroll; in-place accumulation maps to the v7x MRB).
    acc_ref[...] = jnp.dot(w1_ref[0], xbuf_ref[:, offsets[0]:offsets[0] + lt],
                           preferred_element_type=jnp.float32)
    for i in range(1, 9):
        off = offsets[i]
        acc_ref[...] += jnp.dot(w1_ref[i], xbuf_ref[:, off:off + lt],
                                preferred_element_type=jnp.float32)

    # BN1 shift + ReLU in f32, already channel-major (lane-dense) -- no transpose.
    feat = jnp.maximum(acc_ref[...] + b1_ref[...], 0.0)            # (Cout, Lt)

    # Partial global-average-pool over this tile's valid pixels (f32).
    pool_ref[...] += jnp.sum(feat * mask_ref[...], axis=1, keepdims=True)

    # Store this tile's (un-attenuated) features into the resident output block.
    start = pl.multiple_of(t * lt, 128)
    out_ref[0, :, pl.ds(start, lt)] = feat.astype(out_ref.dtype)

    # Last tile: finish pool, 1x1 conv + BN2 shift + sigmoid (f32), rescale in place.
    @pl.when(t == pl.num_programs(1) - 1)
    def _():
        pooled = pool_ref[...] * inv_hw                             # (Cout, 1)
        att = jnp.dot(w2_ref[...], pooled, preferred_element_type=jnp.float32)
        att = jax.nn.sigmoid(att + b2_ref[...])                     # (Cout, 1)
        out_ref[0] = (out_ref[0].astype(jnp.float32) * att).astype(out_ref.dtype)


# ----------------------------------------------------------------------------
# Wrapper: NCHW in, NCHW (bf16) out.
# ----------------------------------------------------------------------------
def attention_refinement_module(x_nchw, params, *, tile_pixels=512):
    N, Cin, H, W = x_nchw.shape
    w1 = params["conv1_w"]                                   # (Cout, Cin, 3, 3)
    w2 = params["conv2_w"]                                   # (Cout, Cout, 1, 1)
    Cout = w1.shape[0]
    eps = 1e-5

    # Fold eval-mode BatchNorm into scale/shift; fold the scales into weights.
    s1 = params["bn1_gamma"] / jnp.sqrt(params["bn1_var"] + eps)
    b1 = params["bn1_beta"] - params["bn1_mean"] * s1
    s2 = params["bn2_gamma"] / jnp.sqrt(params["bn2_var"] + eps)
    b2 = params["bn2_beta"] - params["bn2_mean"] * s2

    # Flattened-spatial geometry: the padded (H+2, W+2) image is flattened so
    # the 9 conv taps become shifted windows (offset = kh*(W+2)+kw).  The two
    # pad columns per row only produce garbage output positions which are
    # masked out of the pooling and sliced off at the end.
    Wp = W + 2
    n_rows = H * Wp                       # output pixel axis (incl. 2 junk cols/row)
    max_off = 2 * Wp + 2                  # largest tap offset == halo needed
    Lh = _round_up(max_off, 128)          # halo block (lane-aligned)
    Lt = _round_up(max(tile_pixels, Lh), Lh)   # pixel tile; multiple of Lh (and 128)
    T = pl.cdiv(n_rows, Lt)               # pixel tiles per image
    Ltotal = T * Lt                       # resident lane-dense output length
    Lpad = Ltotal + Lh                    # always >= (H+2)*(W+2)

    # Input: NCHW -> pad H/W -> flatten -> zero-extend -> bf16.  No transpose.
    xp = jnp.pad(x_nchw, ((0, 0), (0, 0), (1, 1), (1, 1)))    # (N, Cin, H+2, Wp)
    x_flat = xp.reshape(N, Cin, (H + 2) * Wp)
    x_flat = jnp.pad(x_flat, ((0, 0), (0, 0), (0, Lpad - (H + 2) * Wp)))
    x_flat = x_flat.astype(jnp.bfloat16)

    # 3x3 weights, BN1 scale folded, tap-major + channel-major: (9, Cout, Cin).
    w1_eff = w1 * s1[:, None, None, None]
    w1_taps = (jnp.transpose(w1_eff, (2, 3, 0, 1))
               .reshape(9, Cout, Cin).astype(jnp.bfloat16))

    # 1x1 attention weights, BN2 scale folded (tiny; attention path stays f32).
    w2_eff = (w2[:, :, 0, 0] * s2[:, None]).astype(jnp.float32)   # (Cout, Cout)

    b1c = b1.reshape(Cout, 1).astype(jnp.float32)
    b2c = b2.reshape(Cout, 1).astype(jnp.float32)

    # Static valid-pixel mask along the flattened pixel axis.
    pos = np.arange(Ltotal)
    mask = jnp.asarray(((pos < n_rows) & ((pos % Wp) < W))
                       .astype(np.float32).reshape(1, Ltotal))

    offsets = tuple(kh * Wp + kw for kh in range(3) for kw in range(3))
    kernel = functools.partial(_arm_kernel, offsets=offsets, lt=Lt,
                               inv_hw=1.0 / float(H * W))

    cost = pl.CostEstimate(
        flops=int(N * (2 * 9 * Ltotal * Cin * Cout + 6 * Cout * Ltotal
                       + 2 * Cout * Cout)),
        transcendentals=int(N * Cout),
        bytes_accessed=int(N * T * (Lt + Lh) * Cin * 2             # input + halo re-reads
                           + 9 * Cout * Cin * 2 + Cout * Cout * 4
                           + (2 * Cout + Ltotal) * 4
                           + N * Cout * Ltotal * 2),               # bf16 writeback
    )

    khalo = Lt // Lh
    out_flat = pl.pallas_call(
        kernel,
        out_shape=jax.ShapeDtypeStruct((N, Cout, Ltotal), jnp.bfloat16),
        grid_spec=pltpu.PrefetchScalarGridSpec(
            num_scalar_prefetch=0,
            grid=(N, T),
            in_specs=[
                # Main Lt-wide pixel chunk of this tile.
                pl.BlockSpec((1, Cin, Lt), lambda b, t: (b, 0, t)),
                # Lh-wide halo (the next chunk); costs Lh/Lt extra input reads
                # but keeps the automatic BlockSpec pipeline (no manual DMA).
                pl.BlockSpec((1, Cin, Lh), lambda b, t: (b, 0, (t + 1) * khalo)),
                # Grid-constant operands (re-fetch is skipped automatically;
                # pipeline_mode=pl.Buffered(1) would also drop their 2nd buffer).
                pl.BlockSpec((9, Cout, Cin), lambda b, t: (0, 0, 0)),
                pl.BlockSpec((Cout, 1), lambda b, t: (0, 0)),
                pl.BlockSpec((Cout, Cout), lambda b, t: (0, 0)),
                pl.BlockSpec((Cout, 1), lambda b, t: (0, 0)),
                pl.BlockSpec((1, Lt), lambda b, t: (0, t)),
            ],
            # Constant block index across t => output stays resident in VMEM and
            # doubles as the persistent feat buffer; written back once per batch.
            out_specs=pl.BlockSpec((1, Cout, Ltotal), lambda b, t: (b, 0, 0)),
            scratch_shapes=[
                pltpu.VMEM((Cin, Lt + Lh), jnp.bfloat16),   # stitched input window
                pltpu.VMEM((Cout, Lt), jnp.float32),        # conv accumulator
                pltpu.VMEM((Cout, 1), jnp.float32),         # pooled sum
            ]),
        compiler_params=pltpu.CompilerParams(
            # Batch axis feeds both v7x TensorCores for N>=2; the pixel-tile axis
            # carries the pooling reduction so it stays "arbitrary".
            # (For N=1 v7x inference, the tile axis could be core-split with
            # per-core partial pools combined before the sigmoid.)
            dimension_semantics=("parallel", "arbitrary"),
            # With pixel tiling the live set is ~10 MB even at the production
            # arm16 shape (Cin=512, 64x128 map) -- fits every chip incl. v7x.
            vmem_limit_bytes=32 * 1024 * 1024,
        ),
        cost_estimate=cost,
    )(x_flat, x_flat, w1_taps, b1c, w2_eff, b2c, mask)

    # (N, Cout, Ltotal) -> drop garbage pixels -> NCHW (slice/reshape, no transpose).
    out = out_flat[:, :, :n_rows].reshape(N, Cout, H, Wp)[:, :, :, :W]
    return out


# ----------------------------------------------------------------------------
# Pure-JAX reference (mirrors the PyTorch forward, eval-mode BN, f32).
# ----------------------------------------------------------------------------
def reference_forward(x_nchw, params):
    eps = 1e-5
    feat = lax.conv_general_dilated(
        x_nchw, params["conv1_w"], window_strides=(1, 1), padding=((1, 1), (1, 1)),
        dimension_numbers=("NCHW", "OIHW", "NCHW"))
    s1 = params["bn1_gamma"] / jnp.sqrt(params["bn1_var"] + eps)
    b1 = params["bn1_beta"] - params["bn1_mean"] * s1
    feat = feat * s1[None, :, None, None] + b1[None, :, None, None]
    feat = jnp.maximum(feat, 0.0)

    atten = jnp.mean(feat, axis=(2, 3), keepdims=True)       # global avg pool
    atten = lax.conv_general_dilated(
        atten, params["conv2_w"], window_strides=(1, 1), padding=((0, 0), (0, 0)),
        dimension_numbers=("NCHW", "OIHW", "NCHW"))
    s2 = params["bn2_gamma"] / jnp.sqrt(params["bn2_var"] + eps)
    b2 = params["bn2_beta"] - params["bn2_mean"] * s2
    atten = atten * s2[None, :, None, None] + b2[None, :, None, None]
    atten = jax.nn.sigmoid(atten)
    return feat * atten


# ----------------------------------------------------------------------------
def make_params(key, in_chan, out_chan):
    ks = jax.random.split(key, 8)
    return {
        "conv1_w": 0.2 * jax.random.normal(ks[0], (out_chan, in_chan, 3, 3), jnp.float32),
        "bn1_gamma": 1.0 + 0.1 * jax.random.normal(ks[1], (out_chan,), jnp.float32),
        "bn1_beta": 0.1 * jax.random.normal(ks[2], (out_chan,), jnp.float32),
        "bn1_mean": 0.1 * jax.random.normal(ks[3], (out_chan,), jnp.float32),
        "bn1_var": jnp.abs(1.0 + 0.1 * jax.random.normal(ks[4], (out_chan,), jnp.float32)),
        "conv2_w": 0.2 * jax.random.normal(ks[5], (out_chan, out_chan, 1, 1), jnp.float32),
        "bn2_gamma": 1.0 + 0.1 * jax.random.normal(ks[6], (out_chan,), jnp.float32),
        "bn2_beta": 0.1 * jax.random.normal(ks[7], (out_chan,), jnp.float32),
        "bn2_mean": jnp.zeros((out_chan,), jnp.float32),
        "bn2_var": jnp.ones((out_chan,), jnp.float32),
    }


if __name__ == "__main__":
    key = jax.random.PRNGKey(0)
    kx, kp = jax.random.split(key)

    N, Cin, Cout, H, W = 2, 4, 8, 16, 16
    x = jax.random.normal(kx, (N, Cin, H, W), jnp.float32)    # NCHW, like PyTorch
    params = make_params(kp, Cin, Cout)

    # tile_pixels=128 forces 3 pixel tiles at this demo size, exercising the
    # multi-tile pooling accumulation and the last-tile attention rescale.
    out = jax.block_until_ready(
        attention_refinement_module(x, params, tile_pixels=128))
    ref = jax.block_until_ready(reference_forward(x, params))

    assert out.shape == (N, Cout, H, W), out.shape
    # bf16 activations / weights / output inside the kernel -> looser tolerance.
    np.testing.assert_allclose(np.asarray(out.astype(jnp.float32)),
                               np.asarray(ref), rtol=2e-2, atol=2e-2)

    print("KERNEL_OK")
</pallas_src>

<mosaic_0001>
module attributes {stable_mosaic.version = 11 : i64} {
  func.func @_arm_kernel(%arg0: i32, %arg1: i32, %arg2: memref<1x4x128xbf16, #tpu.memory_space<vmem>>, %arg3: memref<1x4x128xbf16, #tpu.memory_space<vmem>>, %arg4: memref<9x8x4xbf16, #tpu.memory_space<vmem>>, %arg5: memref<8x1xf32, #tpu.memory_space<vmem>>, %arg6: memref<8x8xf32, #tpu.memory_space<vmem>>, %arg7: memref<8x1xf32, #tpu.memory_space<vmem>>, %arg8: memref<1x128xf32, #tpu.memory_space<vmem>>, %arg9: memref<1x8x384xbf16, #tpu.memory_space<vmem>>, %arg10: memref<4x256xbf16, #tpu.memory_space<vmem>>, %arg11: memref<8x128xf32, #tpu.memory_space<vmem>>, %arg12: memref<8x1xf32, #tpu.memory_space<vmem>>) attributes {dimension_semantics = [#tpu.dimension_semantics<parallel>, #tpu.dimension_semantics<arbitrary>], iteration_bounds = array<i64: 2, 3>, scalar_prefetch = 0 : i64, scratch_operands = 3 : i64, tpu.core_type = #tpu.core_type<tc>, window_params = [{transform_indices = @transform_0, window_bounds = array<i64: 1, 4, 128>}, {transform_indices = @transform_1, window_bounds = array<i64: 1, 4, 128>}, {pipeline_mode = #tpu.pipeline_mode<synchronous>, transform_indices = @transform_2, window_bounds = array<i64: 9, 8, 4>}, {pipeline_mode = #tpu.pipeline_mode<synchronous>, transform_indices = @transform_3, window_bounds = array<i64: 8, 1>}, {pipeline_mode = #tpu.pipeline_mode<synchronous>, transform_indices = @transform_4, window_bounds = array<i64: 8, 8>}, {pipeline_mode = #tpu.pipeline_mode<synchronous>, transform_indices = @transform_5, window_bounds = array<i64: 8, 1>}, {transform_indices = @transform_6, window_bounds = array<i64: 1, 128>}, {transform_indices = @transform_7, window_bounds = array<i64: 1, 8, 384>}]} {
    %c0_i32 = arith.constant 0 : i32
    %0 = arith.cmpi eq, %arg1, %c0_i32 : i32
    %1 = arith.extui %0 : i1 to i32
    %c0_i32_0 = arith.constant 0 : i32
    %2 = arith.cmpi ne, %1, %c0_i32_0 : i32
    scf.if %2 {
      %cst_97 = arith.constant 0.000000e+00 : f32
      %94 = vector.broadcast %cst_97 : f32 to vector<8x1xf32>
      %c0_98 = arith.constant 0 : index
      %c0_99 = arith.constant 0 : index
      %95 = vector.load %arg12[%c0_98, %c0_99] : memref<8x1xf32, #tpu.memory_space<vmem>>, vector<8x1xf32>
      tpu.vector_store %arg12[%c0_98, %c0_99], %94 {strides = array<i32>} : memref<8x1xf32, #tpu.memory_space<vmem>>, vector<8x1xf32>,
    } else {
    }
    %c0 = arith.constant 0 : index
    %c0_1 = arith.constant 0 : index
    %c0_2 = arith.constant 0 : index
    %3 = vector.load %arg2[%c0, %c0_1, %c0_2] : memref<1x4x128xbf16, #tpu.memory_space<vmem>>, vector<1x4x128xbf16>
    %4 = vector.shape_cast %3 : vector<1x4x128xbf16> to vector<4x128xbf16>
    %c0_3 = arith.constant 0 : index
    %c0_4 = arith.constant 0 : index
    %5 = vector.load %arg10[%c0_3, %c0_4] : memref<4x256xbf16, #tpu.memory_space<vmem>>, vector<4x128xbf16>
    tpu.vector_store %arg10[%c0_3, %c0_4], %4 {strides = array<i32>} : memref<4x256xbf16, #tpu.memory_space<vmem>>, vector<4x128xbf16>,
    %c0_5 = arith.constant 0 : index
    %c0_6 = arith.constant 0 : index
    %c0_7 = arith.constant 0 : index
    %6 = vector.load %arg3[%c0_5, %c0_6, %c0_7] : memref<1x4x128xbf16, #tpu.memory_space<vmem>>, vector<1x4x128xbf16>
    %7 = vector.shape_cast %6 : vector<1x4x128xbf16> to vector<4x128xbf16>
    %c0_8 = arith.constant 0 : index
    %c128 = arith.constant 128 : index
    %8 = vector.load %arg10[%c0_8, %c128] : memref<4x256xbf16, #tpu.memory_space<vmem>>, vector<4x128xbf16>
    tpu.vector_store %arg10[%c0_8, %c128], %7 {strides = array<i32>} : memref<4x256xbf16, #tpu.memory_space<vmem>>, vector<4x128xbf16>,
    %c0_9 = arith.constant 0 : index
    %c0_10 = arith.constant 0 : index
    %c0_11 = arith.constant 0 : index
    %9 = vector.load %arg4[%c0_9, %c0_10, %c0_11] : memref<9x8x4xbf16, #tpu.memory_space<vmem>>, vector<1x8x4xbf16>
    %10 = vector.shape_cast %9 : vector<1x8x4xbf16> to vector<8x4xbf16>
    %c0_12 = arith.constant 0 : index
    %c0_13 = arith.constant 0 : index
    %11 = vector.load %arg10[%c0_12, %c0_13] : memref<4x256xbf16, #tpu.memory_space<vmem>>, vector<4x128xbf16>
    %cst = arith.constant dense<0.000000e+00> : vector<8x128xf32>
    %12 = tpu.matmul %10, %11, %cst {dimension_numbers = #tpu.dot_dimension_numbers<[1], [0], [0], [1], [0, 0, 1, 1], [], []>} : vector<8x4xbf16>, vector<4x128xbf16>, vector<8x128xf32> -> vector<8x128xf32>
    %c0_14 = arith.constant 0 : index
    %c0_15 = arith.constant 0 : index
    %13 = vector.load %arg11[%c0_14, %c0_15] : memref<8x128xf32, #tpu.memory_space<vmem>>, vector<8x128xf32>
    tpu.vector_store %arg11[%c0_14, %c0_15], %12 {strides = array<i32>} : memref<8x128xf32, #tpu.memory_space<vmem>>, vector<8x128xf32>,
    %c0_16 = arith.constant 0 : index
    %c0_17 = arith.constant 0 : index
    %14 = vector.load %arg11[%c0_16, %c0_17] : memref<8x128xf32, #tpu.memory_space<vmem>>, vector<8x128xf32>
    %c1 = arith.constant 1 : index
    %c0_18 = arith.constant 0 : index
    %c0_19 = arith.constant 0 : index
    %15 = vector.load %arg4[%c1, %c0_18, %c0_19] : memref<9x8x4xbf16, #tpu.memory_space<vmem>>, vector<1x8x4xbf16>
    %16 = vector.shape_cast %15 : vector<1x8x4xbf16> to vector<8x4xbf16>
    %c0_20 = arith.constant 0 : index
    %c1_21 = arith.constant 1 : index
    %17 = vector.load %arg10[%c0_20, %c1_21] : memref<4x256xbf16, #tpu.memory_space<vmem>>, vector<4x128xbf16>
    %cst_22 = arith.constant dense<0.000000e+00> : vector<8x128xf32>
    %18 = tpu.matmul %16, %17, %cst_22 {dimension_numbers = #tpu.dot_dimension_numbers<[1], [0], [0], [1], [0, 0, 1, 1], [], []>} : vector<8x4xbf16>, vector<4x128xbf16>, vector<8x128xf32> -> vector<8x128xf32>
    %19 = arith.addf %14, %18 : vector<8x128xf32>
    %c0_23 = arith.constant 0 : index
    %c0_24 = arith.constant 0 : index
    %20 = vector.load %arg11[%c0_23, %c0_24] : memref<8x128xf32, #tpu.memory_space<vmem>>, vector<8x128xf32>
    tpu.vector_store %arg11[%c0_23, %c0_24], %19 {strides = array<i32>} : memref<8x128xf32, #tpu.memory_space<vmem>>, vector<8x128xf32>,
    %c0_25 = arith.constant 0 : index
    %c0_26 = arith.constant 0 : index
    %21 = vector.load %arg11[%c0_25, %c0_26] : memref<8x128xf32, #tpu.memory_space<vmem>>, vector<8x128xf32>
    %c2 = arith.constant 2 : index
    %c0_27 = arith.constant 0 : index
    %c0_28 = arith.constant 0 : index
    %22 = vector.load %arg4[%c2, %c0_27, %c0_28] : memref<9x8x4xbf16, #tpu.memory_space<vmem>>, vector<1x8x4xbf16>
    %23 = vector.shape_cast %22 : vector<1x8x4xbf16> to vector<8x4xbf16>
    %c0_29 = arith.constant 0 : index
    %c2_30 = arith.constant 2 : index
    %24 = vector.load %arg10[%c0_29, %c2_30] : memref<4x256xbf16, #tpu.memory_space<vmem>>, vector<4x128xbf16>
    %cst_31 = arith.constant dense<0.000000e+00> : vector<8x128xf32>
    %25 = tpu.matmul %23, %24, %cst_31 {dimension_numbers = #tpu.dot_dimension_numbers<[1], [0], [0], [1], [0, 0, 1, 1], [], []>} : vector<8x4xbf16>, vector<4x128xbf16>, vector<8x128xf32> -> vector<8x128xf32>
    %26 = arith.addf %21, %25 : vector<8x128xf32>
    %c0_32 = arith.constant 0 : index
    %c0_33 = arith.constant 0 : index
    %27 = vector.load %arg11[%c0_32, %c0_33] : memref<8x128xf32, #tpu.memory_space<vmem>>, vector<8x128xf32>
    tpu.vector_store %arg11[%c0_32, %c0_33], %26 {strides = array<i32>} : memref<8x128xf32, #tpu.memory_space<vmem>>, vector<8x128xf32>,
    %c0_34 = arith.constant 0 : index
    %c0_35 = arith.constant 0 : index
    %28 = vector.load %arg11[%c0_34, %c0_35] : memref<8x128xf32, #tpu.memory_space<vmem>>, vector<8x128xf32>
    %c3 = arith.constant 3 : index
    %c0_36 = arith.constant 0 : index
    %c0_37 = arith.constant 0 : index
    %29 = vector.load %arg4[%c3, %c0_36, %c0_37] : memref<9x8x4xbf16, #tpu.memory_space<vmem>>, vector<1x8x4xbf16>
    %30 = vector.shape_cast %29 : vector<1x8x4xbf16> to vector<8x4xbf16>
    %c0_38 = arith.constant 0 : index
    %c18 = arith.constant 18 : index
    %31 = vector.load %arg10[%c0_38, %c18] : memref<4x256xbf16, #tpu.memory_space<vmem>>, vector<4x128xbf16>
    %cst_39 = arith.constant dense<0.000000e+00> : vector<8x128xf32>
    %32 = tpu.matmul %30, %31, %cst_39 {dimension_numbers = #tpu.dot_dimension_numbers<[1], [0], [0], [1], [0, 0, 1, 1], [], []>} : vector<8x4xbf16>, vector<4x128xbf16>, vector<8x128xf32> -> vector<8x128xf32>
    %33 = arith.addf %28, %32 : vector<8x128xf32>
    %c0_40 = arith.constant 0 : index
    %c0_41 = arith.constant 0 : index
    %34 = vector.load %arg11[%c0_40, %c0_41] : memref<8x128xf32, #tpu.memory_space<vmem>>, vector<8x128xf32>
    tpu.vector_store %arg11[%c0_40, %c0_41], %33 {strides = array<i32>} : memref<8x128xf32, #tpu.memory_space<vmem>>, vector<8x128xf32>,
    %c0_42 = arith.constant 0 : index
    %c0_43 = arith.constant 0 : index
    %35 = vector.load %arg11[%c0_42, %c0_43] : memref<8x128xf32, #tpu.memory_space<vmem>>, vector<8x128xf32>
    %c4 = arith.constant 4 : index
    %c0_44 = arith.constant 0 : index
    %c0_45 = arith.constant 0 : index
    %36 = vector.load %arg4[%c4, %c0_44, %c0_45] : memref<9x8x4xbf16, #tpu.memory_space<vmem>>, vector<1x8x4xbf16>
    %37 = vector.shape_cast %36 : vector<1x8x4xbf16> to vector<8x4xbf16>
    %c0_46 = arith.constant 0 : index
    %c19 = arith.constant 19 : index
    %38 = vector.load %arg10[%c0_46, %c19] : memref<4x256xbf16, #tpu.memory_space<vmem>>, vector<4x128xbf16>
    %cst_47 = arith.constant dense<0.000000e+00> : vector<8x128xf32>
    %39 = tpu.matmul %37, %38, %cst_47 {dimension_numbers = #tpu.dot_dimension_numbers<[1], [0], [0], [1], [0, 0, 1, 1], [], []>} : vector<8x4xbf16>, vector<4x128xbf16>, vector<8x128xf32> -> vector<8x128xf32>
    %40 = arith.addf %35, %39 : vector<8x128xf32>
    %c0_48 = arith.constant 0 : index
    %c0_49 = arith.constant 0 : index
    %41 = vector.load %arg11[%c0_48, %c0_49] : memref<8x128xf32, #tpu.memory_space<vmem>>, vector<8x128xf32>
    tpu.vector_store %arg11[%c0_48, %c0_49], %40 {strides = array<i32>} : memref<8x128xf32, #tpu.memory_space<vmem>>, vector<8x128xf32>,
    %c0_50 = arith.constant 0 : index
    %c0_51 = arith.constant 0 : index
    %42 = vector.load %arg11[%c0_50, %c0_51] : memref<8x128xf32, #tpu.memory_space<vmem>>, vector<8x128xf32>
    %c5 = arith.constant 5 : index
    %c0_52 = arith.constant 0 : index
    %c0_53 = arith.constant 0 : index
    %43 = vector.load %arg4[%c5, %c0_52, %c0_53] : memref<9x8x4xbf16, #tpu.memory_space<vmem>>, vector<1x8x4xbf16>
    %44 = vector.shape_cast %43 : vector<1x8x4xbf16> to vector<8x4xbf16>
    %c0_54 = arith.constant 0 : index
    %c20 = arith.constant 20 : index
    %45 = vector.load %arg10[%c0_54, %c20] : memref<4x256xbf16, #tpu.memory_space<vmem>>, vector<4x128xbf16>
    %cst_55 = arith.constant dense<0.000000e+00> : vector<8x128xf32>
    %46 = tpu.matmul %44, %45, %cst_55 {dimension_numbers = #tpu.dot_dimension_numbers<[1], [0], [0], [1], [0, 0, 1, 1], [], []>} : vector<8x4xbf16>, vector<4x128xbf16>, vector<8x128xf32> -> vector<8x128xf32>
    %47 = arith.addf %42, %46 : vector<8x128xf32>
    %c0_56 = arith.constant 0 : index
    %c0_57 = arith.constant 0 : index
    %48 = vector.load %arg11[%c0_56, %c0_57] : memref<8x128xf32, #tpu.memory_space<vmem>>, vector<8x128xf32>
    tpu.vector_store %arg11[%c0_56, %c0_57], %47 {strides = array<i32>} : memref<8x128xf32, #tpu.memory_space<vmem>>, vector<8x128xf32>,
    %c0_58 = arith.constant 0 : index
    %c0_59 = arith.constant 0 : index
    %49 = vector.load %arg11[%c0_58, %c0_59] : memref<8x128xf32, #tpu.memory_space<vmem>>, vector<8x128xf32>
    %c6 = arith.constant 6 : index
    %c0_60 = arith.constant 0 : index
    %c0_61 = arith.constant 0 : index
    %50 = vector.load %arg4[%c6, %c0_60, %c0_61] : memref<9x8x4xbf16, #tpu.memory_space<vmem>>, vector<1x8x4xbf16>
    %51 = vector.shape_cast %50 : vector<1x8x4xbf16> to vector<8x4xbf16>
    %c0_62 = arith.constant 0 : index
    %c36 = arith.constant 36 : index
    %52 = vector.load %arg10[%c0_62, %c36] : memref<4x256xbf16, #tpu.memory_space<vmem>>, vector<4x128xbf16>
    %cst_63 = arith.constant dense<0.000000e+00> : vector<8x128xf32>
    %53 = tpu.matmul %51, %52, %cst_63 {dimension_numbers = #tpu.dot_dimension_numbers<[1], [0], [0], [1], [0, 0, 1, 1], [], []>} : vector<8x4xbf16>, vector<4x128xbf16>, vector<8x128xf32> -> vector<8x128xf32>
    %54 = arith.addf %49, %53 : vector<8x128xf32>
    %c0_64 = arith.constant 0 : index
    %c0_65 = arith.constant 0 : index
    %55 = vector.load %arg11[%c0_64, %c0_65] : memref<8x128xf32, #tpu.memory_space<vmem>>, vector<8x128xf32>
    tpu.vector_store %arg11[%c0_64, %c0_65], %54 {strides = array<i32>} : memref<8x128xf32, #tpu.memory_space<vmem>>, vector<8x128xf32>,
    %c0_66 = arith.constant 0 : index
    %c0_67 = arith.constant 0 : index
    %56 = vector.load %arg11[%c0_66, %c0_67] : memref<8x128xf32, #tpu.memory_space<vmem>>, vector<8x128xf32>
    %c7 = arith.constant 7 : index
    %c0_68 = arith.constant 0 : index
    %c0_69 = arith.constant 0 : index
    %57 = vector.load %arg4[%c7, %c0_68, %c0_69] : memref<9x8x4xbf16, #tpu.memory_space<vmem>>, vector<1x8x4xbf16>
    %58 = vector.shape_cast %57 : vector<1x8x4xbf16> to vector<8x4xbf16>
    %c0_70 = arith.constant 0 : index
    %c37 = arith.constant 37 : index
    %59 = vector.load %arg10[%c0_70, %c37] : memref<4x256xbf16, #tpu.memory_space<vmem>>, vector<4x128xbf16>
    %cst_71 = arith.constant dense<0.000000e+00> : vector<8x128xf32>
    %60 = tpu.matmul %58, %59, %cst_71 {dimension_numbers = #tpu.dot_dimension_numbers<[1], [0], [0], [1], [0, 0, 1, 1], [], []>} : vector<8x4xbf16>, vector<4x128xbf16>, vector<8x128xf32> -> vector<8x128xf32>
    %61 = arith.addf %56, %60 : vector<8x128xf32>
    %c0_72 = arith.constant 0 : index
    %c0_73 = arith.constant 0 : index
    %62 = vector.load %arg11[%c0_72, %c0_73] : memref<8x128xf32, #tpu.memory_space<vmem>>, vector<8x128xf32>
    tpu.vector_store %arg11[%c0_72, %c0_73], %61 {strides = array<i32>} : memref<8x128xf32, #tpu.memory_space<vmem>>, vector<8x128xf32>,
    %c0_74 = arith.constant 0 : index
    %c0_75 = arith.constant 0 : index
    %63 = vector.load %arg11[%c0_74, %c0_75] : memref<8x128xf32, #tpu.memory_space<vmem>>, vector<8x128xf32>
    %c8 = arith.constant 8 : index
    %c0_76 = arith.constant 0 : index
    %c0_77 = arith.constant 0 : index
    %64 = vector.load %arg4[%c8, %c0_76, %c0_77] : memref<9x8x4xbf16, #tpu.memory_space<vmem>>, vector<1x8x4xbf16>
    %65 = vector.shape_cast %64 : vector<1x8x4xbf16> to vector<8x4xbf16>
    %c0_78 = arith.constant 0 : index
    %c38 = arith.constant 38 : index
    %66 = vector.load %arg10[%c0_78, %c38] : memref<4x256xbf16, #tpu.memory_space<vmem>>, vector<4x128xbf16>
    %cst_79 = arith.constant dense<0.000000e+00> : vector<8x128xf32>
    %67 = tpu.matmul %65, %66, %cst_79 {dimension_numbers = #tpu.dot_dimension_numbers<[1], [0], [0], [1], [0, 0, 1, 1], [], []>} : vector<8x4xbf16>, vector<4x128xbf16>, vector<8x128xf32> -> vector<8x128xf32>
    %68 = arith.addf %63, %67 : vector<8x128xf32>
    %c0_80 = arith.constant 0 : index
    %c0_81 = arith.constant 0 : index
    %69 = vector.load %arg11[%c0_80, %c0_81] : memref<8x128xf32, #tpu.memory_space<vmem>>, vector<8x128xf32>
    tpu.vector_store %arg11[%c0_80, %c0_81], %68 {strides = array<i32>} : memref<8x128xf32, #tpu.memory_space<vmem>>, vector<8x128xf32>,
    %c0_82 = arith.constant 0 : index
    %c0_83 = arith.constant 0 : index
    %70 = vector.load %arg11[%c0_82, %c0_83] : memref<8x128xf32, #tpu.memory_space<vmem>>, vector<8x128xf32>
    %c0_84 = arith.constant 0 : index
    %c0_85 = arith.constant 0 : index
    %71 = vector.load %arg5[%c0_84, %c0_85] : memref<8x1xf32, #tpu.memory_space<vmem>>, vector<8x1xf32>
    %72 = vector.broadcast %71 : vector<8x1xf32> to vector<8x128xf32>
    %73 = arith.addf %70, %72 : vector<8x128xf32>
    %cst_86 = arith.constant 0.000000e+00 : f32
    %74 = vector.broadcast %cst_86 : f32 to vector<8x128xf32>
    %75 = arith.maximumf %73, %74 : vector<8x128xf32>
    %c0_87 = arith.constant 0 : index
    %c0_88 = arith.constant 0 : index
    %76 = vector.load %arg12[%c0_87, %c0_88] : memref<8x1xf32, #tpu.memory_space<vmem>>, vector<8x1xf32>
    %c0_89 = arith.constant 0 : index
    %c0_90 = arith.constant 0 : index
    %77 = vector.load %arg8[%c0_89, %c0_90] : memref<1x128xf32, #tpu.memory_space<vmem>>, vector<1x128xf32>
    %78 = vector.broadcast %77 : vector<1x128xf32> to vector<8x128xf32>
    %79 = arith.mulf %75, %78 : vector<8x128xf32>
    %cst_91 = arith.constant dense<0.000000e+00> : vector<8xf32>
    %80 = vector.multi_reduction <add>, %79, %cst_91 [1] : vector<8x128xf32> to vector<8xf32>
    %81 = vector.shape_cast %80 : vector<8xf32> to vector<8x1xf32>
    %82 = arith.addf %76, %81 : vector<8x1xf32>
    %c0_92 = arith.constant 0 : index
    %c0_93 = arith.constant 0 : index
    %83 = vector.load %arg12[%c0_92, %c0_93] : memref<8x1xf32, #tpu.memory_space<vmem>>, vector<8x1xf32>
    tpu.vector_store %arg12[%c0_92, %c0_93], %82 {strides = array<i32>} : memref<8x1xf32, #tpu.memory_space<vmem>>, vector<8x1xf32>,
    %c128_i32 = arith.constant 128 : i32
    %84 = arith.muli %arg1, %c128_i32 : i32
    %85 = tpu.assume_multiple %84, 128 : i32
    %86 = arith.truncf %75 : vector<8x128xf32> to vector<8x128xbf16>
    %c0_94 = arith.constant 0 : index
    %c0_95 = arith.constant 0 : index
    %87 = arith.index_cast %85 : i32 to index
    %88 = vector.load %arg9[%c0_94, %c0_95, %87] : memref<1x8x384xbf16, #tpu.memory_space<vmem>>, vector<1x8x128xbf16>
    %89 = vector.shape_cast %88 : vector<1x8x128xbf16> to vector<8x128xbf16>
    %90 = vector.shape_cast %86 : vector<8x128xbf16> to vector<1x8x128xbf16>
    tpu.vector_store %arg9[%c0_94, %c0_95, %87], %90 {strides = array<i32>} : memref<1x8x384xbf16, #tpu.memory_space<vmem>>, vector<1x8x128xbf16>,
    %c2_i32 = arith.constant 2 : i32
    %91 = arith.cmpi eq, %arg1, %c2_i32 : i32
    %92 = arith.extui %91 : i1 to i32
    %c0_i32_96 = arith.constant 0 : i32
    %93 = arith.cmpi ne, %92, %c0_i32_96 : i32
    scf.if %93 {
      %c0_97 = arith.constant 0 : index
      %c0_98 = arith.constant 0 : index
      %94 = vector.load %arg12[%c0_97, %c0_98] : memref<8x1xf32, #tpu.memory_space<vmem>>, vector<8x1xf32>
      %cst_99 = arith.constant 3.906250e-03 : f32
      %95 = vector.broadcast %cst_99 : f32 to vector<8x1xf32>
      %96 = arith.mulf %94, %95 : vector<8x1xf32>
      %c0_100 = arith.constant 0 : index
      %c0_101 = arith.constant 0 : index
      %97 = vector.load %arg6[%c0_100, %c0_101] : memref<8x8xf32, #tpu.memory_space<vmem>>, vector<8x8xf32>
      %cst_102 = arith.constant dense<0.000000e+00> : vector<8x1xf32>
      %98 = tpu.matmul %97, %96, %cst_102 {dimension_numbers = #tpu.dot_dimension_numbers<[1], [0], [0], [1], [0, 0, 1, 1], [], []>} : vector<8x8xf32>, vector<8x1xf32>, vector<8x1xf32> -> vector<8x1xf32>
      %c0_103 = arith.constant 0 : index
      %c0_104 = arith.constant 0 : index
      %99 = vector.load %arg7[%c0_103, %c0_104] : memref<8x1xf32, #tpu.memory_space<vmem>>, vector<8x1xf32>
      %100 = arith.addf %98, %99 : vector<8x1xf32>
      %101 = arith.negf %100 : vector<8x1xf32>
      %102 = math.exp %101 : vector<8x1xf32>
      %cst_105 = arith.constant 1.000000e+00 : f32
      %103 = vector.broadcast %cst_105 : f32 to vector<8x1xf32>
      %104 = arith.addf %103, %102 : vector<8x1xf32>
      %105 = arith.divf %103, %104 : vector<8x1xf32>
      %c0_106 = arith.constant 0 : index
      %c0_107 = arith.constant 0 : index
      %c0_108 = arith.constant 0 : index
      %106 = vector.load %arg9[%c0_106, %c0_107, %c0_108] : memref<1x8x384xbf16, #tpu.memory_space<vmem>>, vector<1x8x384xbf16>
      %107 = vector.shape_cast %106 : vector<1x8x384xbf16> to vector<8x384xbf16>
      %108 = arith.extf %107 : vector<8x384xbf16> to vector<8x384xf32>
      %109 = vector.broadcast %105 : vector<8x1xf32> to vector<8x384xf32>
      %110 = arith.mulf %108, %109 : vector<8x384xf32>
      %111 = arith.truncf %110 : vector<8x384xf32> to vector<8x384xbf16>
      %c0_109 = arith.constant 0 : index
      %c0_110 = arith.constant 0 : index
      %c0_111 = arith.constant 0 : index
      %112 = vector.load %arg9[%c0_109, %c0_110, %c0_111] : memref<1x8x384xbf16, #tpu.memory_space<vmem>>, vector<1x8x384xbf16>
      %113 = vector.shape_cast %112 : vector<1x8x384xbf16> to vector<8x384xbf16>
      %114 = vector.shape_cast %111 : vector<8x384xbf16> to vector<1x8x384xbf16>
      tpu.vector_store %arg9[%c0_109, %c0_110, %c0_111], %114 {strides = array<i32>} : memref<1x8x384xbf16, #tpu.memory_space<vmem>>, vector<1x8x384xbf16>,
    } else {
    }
    return
  }
  func.func @transform_0(%arg0: i32, %arg1: i32) -> (i32, i32, i32) {
    %c0_i32 = arith.constant 0 : i32
    %c0_i32_0 = arith.constant 0 : i32
    return %arg0, %c0_i32, %arg1 : i32, i32, i32
  }
  func.func @transform_1(%arg0: i32, %arg1: i32) -> (i32, i32, i32) {
    %c1_i32 = arith.constant 1 : i32
    %0 = arith.addi %arg1, %c1_i32 : i32
    %c1_i32_0 = arith.constant 1 : i32
    %1 = arith.muli %0, %c1_i32_0 : i32
    %c0_i32 = arith.constant 0 : i32
    %c0_i32_1 = arith.constant 0 : i32
    return %arg0, %c0_i32, %1 : i32, i32, i32
  }
  func.func @transform_2(%arg0: i32, %arg1: i32) -> (i32, i32, i32) {
    %c0_i32 = arith.constant 0 : i32
    %c0_i32_0 = arith.constant 0 : i32
    %c0_i32_1 = arith.constant 0 : i32
    %c0_i32_2 = arith.constant 0 : i32
    return %c0_i32, %c0_i32_0, %c0_i32_1 : i32, i32, i32
  }
  func.func @transform_3(%arg0: i32, %arg1: i32) -> (i32, i32) {
    %c0_i32 = arith.constant 0 : i32
    %c0_i32_0 = arith.constant 0 : i32
    %c0_i32_1 = arith.constant 0 : i32
    return %c0_i32, %c0_i32_0 : i32, i32
  }
  func.func @transform_4(%arg0: i32, %arg1: i32) -> (i32, i32) {
    %c0_i32 = arith.constant 0 : i32
    %c0_i32_0 = arith.constant 0 : i32
    %c0_i32_1 = arith.constant 0 : i32
    return %c0_i32, %c0_i32_0 : i32, i32
  }
  func.func @transform_5(%arg0: i32, %arg1: i32) -> (i32, i32) {
    %c0_i32 = arith.constant 0 : i32
    %c0_i32_0 = arith.constant 0 : i32
    %c0_i32_1 = arith.constant 0 : i32
    return %c0_i32, %c0_i32_0 : i32, i32
  }
  func.func @transform_6(%arg0: i32, %arg1: i32) -> (i32, i32) {
    %c0_i32 = arith.constant 0 : i32
    %c0_i32_0 = arith.constant 0 : i32
    return %c0_i32, %arg1 : i32, i32
  }
  func.func @transform_7(%arg0: i32, %arg1: i32) -> (i32, i32, i32) {
    %c0_i32 = arith.constant 0 : i32
    %c0_i32_0 = arith.constant 0 : i32
    %c0_i32_1 = arith.constant 0 : i32
    return %arg0, %c0_i32, %c0_i32_0 : i32, i32, i32
  }
}

</mosaic_0001>

<bundles_post_ra>
// kernel: tpu_custom_call.1
= control target key start
LH: loop header
LB: loop body
LE: loop exit
PB: predicated region body
PF: predicated region fallthrough
CT: control target
= control target key end

     0   :  { %12 = vsyncpa [#allocation6], 0  ;;  %s1821_s0 = inlined_call_operand.vmem [shape: bf16[2,4,512], index: 0, kind: input, shape index: {}]   ;;  %s1822_s1 = inlined_call_operand.vmem [shape: bf16[2,4,512], index: 1, kind: input, shape index: {}]   ;;  %s1823_s2 = inlined_call_operand.vmem [shape: bf16[9,8,4], index: 2, kind: input, shape index: {}]   ;;  %s1824_s3 = inlined_call_operand.vmem [shape: f32[8,1], index: 3, kind: input, shape index: {}]   ;;  %s1825_s4 = inlined_call_operand.vmem [shape: f32[8,8], index: 4, kind: input, shape index: {}]   ;;  %s1826_s5 = inlined_call_operand.vmem [shape: f32[8,1], index: 5, kind: input, shape index: {}]   ;;  %s1827_s6 = inlined_call_operand.vmem [shape: f32[1,384], index: 6, kind: input, shape index: {}]   ;;  %s1828_s7 = inlined_call_operand.hbm [shape: bf16[2,8,384], index: 7, kind: output, shape index: {}]  }
   0x1   :  { %14 = vsyncpa [#allocation6 + $0x1], 0  ;;  %s1587_s24 = smov 0   ;;  %s1589_s25 = smov 0  }
   0x2   :  { %s1591_s26 = smov 0   ;;  %s1593_s27 = smov 0  }
   0x3   :  { %s1595_s28 = smov 0   ;;  %s1597_s29 = smov 0  }
   0x4   :  { %s1599_s30 = smov 0   ;;  %s1601_s8 = smov 0  }
   0x5 LB: > { %1836 = sst [smem:[#allocation8_spill]] %s1501_s24  ;;  %s1216_s9 = sadd.s32 4294967295, %s1529_s8   ;;  %s1529_s8 = sphi %s1601_s8, %s20_s8   ;;  %s1525_s30 = sphi %s1599_s30, %s1854_s30   ;;  %s1521_s29 = sphi %s1597_s29, %s1853_s29   ;;  %s1517_s28 = sphi %s1595_s28, %s1852_s28   ;;  %s1513_s27 = sphi %s1593_s27, %s1851_s27   ;;  %s1509_s26 = sphi %s1591_s26, %s1850_s26   ;;  %s1505_s25 = sphi %s1589_s25, %s1856_s25   ;;  %s1501_s24 = sphi %s1587_s24, %s1855_s24  }
   0x6   : > { %1837 = sst [smem:[#allocation9_spill]] %s1509_s26  ;;  %s1217_s10 = sadd.s32 4294967294, %s1529_s8  }
   0x7   : > { %1838 = sst [smem:[#allocation10_spill]] %s1521_s29  ;;  %s29_s11 = sadd.s32 1, %s1521_s29 }
   0x8   : > { %1839 = sst [smem:[#allocation11_spill]] %s1525_s30  ;;  %p30_p0 = scmp.ge.s32.totalorder %s29_s11, 3 }
   0x9   : > { %s32_s12 = sadd.s32 1, %s1525_s30  ;;  %p217_p1 = scmp.ne.s32.totalorder %s1509_s26, %s1505_s25 }
   0xa   : > { %p218_p2 = scmp.eq.s32.totalorder %s1216_s9, 5  ;;  %s1858_s11 = smov (%p30_p0, %s29_s11), 0 }
   0xb   : > { %1840 = sst [smem:[#allocation12_spill]] %s1858_s11  ;;  %s1860_s12 = smov (!%p30_p0, %s32_s12), %s1525_s30 }
   0xc   : > { %p1636_p3 = por %p218_p2, %p217_p1  ;;  %p223_p4 = scmp.ne.s32.totalorder %s1505_s25, %s1501_s24 }
   0xd   : > { %p34_p5 = scmp.ge.s32.totalorder %s1860_s12, 2  ;;  %p224_p6 = scmp.eq.s32.totalorder %s1217_s10, 5 }
   0xe   : > { %p1220_p7 = scmp.ge.s32.totalorder %s1529_s8, 1  ;;  %p284_p8 = scmp.lt.s32.totalorder %s1529_s8, 7 }
   0xf   : > { %s1862_s12 = smov (%p34_p5, %s1860_s12), 0  ;;  %p1646_p9 = por %p224_p6, %p223_p4 }
  0x10   : > { %1842 = sst [smem:[#allocation13_spill]] %s1862_s12  ;;  %p285_p10 = pnand %p1220_p7, %p284_p8 }
  0x11   : > { %s1843_s14 = scalar_select %p1646_p9, 1, 0 }
  0x12   : > { %s204_s15 = ssub.s32 %s1525_s30, %s1862_s12  ;;  %s207_s16 = sadd.s32 1, %s1509_s26 }
  0x13   : > { %1844 = sst [smem:[#allocation14_spill]] %s1843_s14  ;;  %p205_p11 = scmp.eq.s32.totalorder %s204_s15, 0 }
  0x14   : > { %288 = sbr.rel (%p285_p10) target bundleno = 933 (0x3a5), region = 48  ;;  %s1832_s18 = sand.u32 (!%p285_p10), 1, %s1505_s25  }
  0x15   : > { %s1654_s17 = scalar_select %p205_p11, %s1509_s26, %s207_s16  }
  0x16   : > { %p331_p12 = scmp.lt.s32.totalorder (!%p285_p10), %s1517_s28, 1  ;;  %s1343_s19 = smul.u32 (!%p285_p10), 12, %s1832_s18 }
  0x17   : > { %1845 = sst [smem:[#allocation15_spill]] %s1654_s17  ;;  %p333_p13 = scmp.lt.s32.totalorder (!%p285_p10), %s1513_s27, 3 }
  0x18   : > { %s339_s21 = sadd.s32 (!%p285_p10), 1, %s1513_s27  ;;  %p349_p1 = scmp.lt.s32.totalorder (!%p285_p10), %s1513_s27, 2 }
  0x19   : > { %s332_s20 = scalar_select %p331_p12, %s1517_s28, 1 }
  0x1a   : > { %s334_s22 = scalar_select %p333_p13, %s1513_s27, 3 }
  0x1b   : > { %s1221_s23 = sshll.u32 %s332_s20, 2  ;;  %p342_p0 = scmp.lt.s32.totalorder %s339_s21, 3 }
  0x1c   : > { %s336_s9 = sadd.s32 %s1221_s23, %s334_s22  ;;  %s1678_s24 = scalar_lea.vmem [#allocation5], %s1343_s19 }
  0x1d   : > { %s1222_s10 = sshll.u32 %s336_s9, 1  ;;  %s1864_s21 = smov (!%p342_p0, %s339_s21), 3 }
  0x1e   : > { %s338_s12 = scalar_lea.vmem %s1821_s0, %s1222_s10  ;;  %s345_s30 = sadd.s32 %s1221_s23, %s1864_s21 }
  0x1f   : > { %s1669_s11 = scalar_select %p349_p1, %s1513_s27, 2 }
  0x20   : > { %s1224_s29 = sshll.u32 %s345_s30, 1  ;;  %p1225_p2 = scmp.ne.s32.totalorder %s1513_s27, 0 }
  0x21   : > { %s351_s26 = scalar_lea.vmem %s1827_s6, %s1669_s11  ;;  %s347_s22 = scalar_lea.vmem %s1822_s1, %s1224_s29 }
  0x22   : > { %356 = sbr.rel (%p1225_p2) target bundleno = 41 (0x29), region = 52 }
  0x27   : > { %vm357_vm0 = vcmask 7168   ;;  %v1531_v0 = vmov 0.0  }
  0x28   : > { %358 = vst.msk [vmem:[#allocation4] sm:$0xff] %vm357_vm0, %v1531_v0 }
  0x29 PF: > { %v359_v1 = vld [vmem:[%s338_s12] sm:$0x3]  ;;  %v1532_v3 = vmov 0.0   ;;  %vm1533_vm1 = vmmov 0   ;;  %vm369_vm2 = vcmask 1041408   ;;  %s1534_s29 = smov 126  }
  0x2a   : > { %v361_v2 = vld [vmem:[%s347_s22] sm:$0x3]  ;;  %360 = vst [vmem:[#allocation2] sm:$0x3] %v359_v1  ;;  %1284 = vmatprep.subr.bf16.mxu0 %v1532_v3  ;;  %1286 = vmatprep.mubr.msk.bf16.mxu0 %vm1533_vm1, %v1532_v3  ;;  %s1535_s30 = smov 127   ;;  %vm365_vm3 = vcmask 31744  }
  0x2b   : > { %362 = vst [vmem:[#allocation2 + $0x2] sm:$0x3] %v361_v2  ;;  %1290 = vmatprep.subr.bf16.mxu1 %v1532_v3  ;;  %1292 = vmatprep.mubr.msk.bf16.mxu1 %vm1533_vm1, %v1532_v3  ;;  %v363_v8 = vld [vmem:[%s1823_s2] sm:$0xf]  ;;  %s1536_s17 = smov 110   ;;  %s1537_s18 = smov 109  }
  0x2c   : > { %s1538_s19 = smov 108   ;;  %s1539_s21 = smov 92   ;;  %v1540_v9 = vmov 0   ;;  %v951_v10 = vld [vmem:[%s1824_s3] sm:$0xff]  ;;  %vm498_vm4 = vcmask 1031168   ;;  %vm431_vm5 = vcmask 1039360  }
  0x2d   : > { %1431 = vset.pattern.permute.xlu0 %v1540_v9  ;;  %s1541_s23 = smov 91   ;;  %s1542_s9 = smov 90   ;;  %vm565_vm6 = vcmask 900096   ;;  %v1227_v19 = vld [vmem:[%s1823_s2 + $0x4] sm:$0xf]  ;;  %vm632_vm7 = vcmask 891904  }
  0x2e   : > { %v1230_v20 = vld [vmem:[%s1823_s2 + $0x8] sm:$0xf]  ;;  %vm699_vm8 = vcmask 883712   ;;  %v1233_v29 = vld [vmem:[%s1823_s2 + $0xc] sm:$0xf]  ;;  %vm766_vm9 = vcmask 752640  }
  0x2f   : > { %v1236_v30 = vld [vmem:[%s1823_s2 + $0x10] sm:$0xf]  ;;  %vm833_vm10 = vcmask 744448   ;;  %v1239_v39 = vld [vmem:[%s1823_s2 + $0x14] sm:$0xf]  ;;  %vm900_vm11 = vcmask 736256  }
  0x30   : > { %v1242_v40 = vld [vmem:[%s1823_s2 + $0x18] sm:$0xf]  ;;  %v1245_v49 = vld [vmem:[%s1823_s2 + $0x1c] sm:$0xf]  ;;  %v1248_v50 = vld [vmem:[%s1823_s2 + $0x20] sm:$0xf] }
  0x31   : > { %v364_v5 = vld [vmem:[#allocation2] sm:$0x3]  ;;  %s1252_s20 = sshll.u32 %s1513_s27, 7  ;;  %vm971_vm12 = vcmask 7168   ;;  %p1254_p4 = scmp.ne.s32.totalorder %s1513_s27, 2 }
  0x32   : > { %v1231_v4 = vld.sshfl [vmem:[#allocation2] sm:$0x33 pattern:$0x76325410]  ;;  %v371_v7 = vsel %vm369_vm2, %v364_v5, 0  ;;  %s975_s22 = sshra.s32 %s1252_s20, 7 }
  0x33   : > { %494 = vrot.lane.b32.xlu1 %v1231_v4, %s1534_s29  ;;  %v493_v6 = vcombine.high %v1231_v4, %v1231_v4  ;;  %427 = vrot.lane.b32.xlu0 %v1231_v4, %s1535_s30 }
  0x34   : > { %1285 = vmatpush3.bf16.msra.mxu0 %v371_v7 }
  0x35   : > { %1296 = vmatprep.subr.bf16.mxu0 %v1532_v3 }
  0x37   : > { %496 = vrot.lane.b32.xlu1 %v493_v6, %s1534_s29  ;;  %429 = vrot.lane.b32.xlu0 %v493_v6, %s1535_s30  ;;  %s1253_s29 = sshll.u32 %s975_s22, 2 }
  0x38   : > { %1287 = vmatmul.mubr.msk.bf16.vlgmr.msra.gmra.mxu0 %vm365_vm3, %v363_v8  ;;  %s978_s14 = scalar_lea.vmem %s1678_s24, %s1253_s29 [#allocation5] }
  0x39   : > { %1298 = vmatprep.mubr.msk.bf16.mxu0 %vm1533_vm1, %v1532_v3 }
  0x3b   : > { %563 = vrot.lane.b32.xlu1 %v493_v6, %s1536_s17  ;;  %561 = vrot.lane.b32.xlu0 %v1231_v4, %s1536_s17 }
  0x3f   : > { %630 = vrot.lane.b32.xlu1 %v493_v6, %s1537_s18  ;;  %628 = vrot.lane.b32.xlu0 %v1231_v4, %s1537_s18 }
  0x43   : > { %697 = vrot.lane.b32.xlu1 %v493_v6, %s1538_s19  ;;  %695 = vrot.lane.b32.xlu0 %v1231_v4, %s1538_s19 }
  0x47   : > { %764 = vrot.lane.b32.xlu1 %v493_v6, %s1539_s21  ;;  %762 = vrot.lane.b32.xlu0 %v1231_v4, %s1539_s21 }
  0x4b   : > { %831 = vrot.lane.b32.xlu1 %v493_v6, %s1541_s23  ;;  %829 = vrot.lane.b32.xlu0 %v1231_v4, %s1541_s23 }
  0x4f   : > { %898 = vrot.lane.b32.xlu1 %v493_v6, %s1542_s9  ;;  %896 = vrot.lane.b32.xlu0 %v1231_v4, %s1542_s9 }
  0x53   : > { %954 = vperm.xlu0 %1431, %v951_v10  }
  0xa5   : > { %v495_v11 = vpop.permute.xlu1 %494  ;;  %v428_v12 = vpop.permute.xlu0 %427 }
  0xa9   : > { %v497_v13 = vpop.permute.xlu1 %496  ;;  %v430_v14 = vpop.permute.xlu0 %429 }
  0xaa   : > { %v499_v15 = vsel %vm498_vm4, %v495_v11, %v497_v13  ;;  %v432_v16 = vsel %vm431_vm5, %v428_v12, %v430_v14 }
  0xab   : > { %v504_v17 = vsel %vm369_vm2, %v499_v15, 0  ;;  %v437_v18 = vsel %vm369_vm2, %v432_v16, 0 }
  0xac   : > { %1291 = vmatpush3.bf16.msra.mxu1 %v437_v18  ;;  %1297 = vmatpush3.bf16.msra.mxu0 %v504_v17 }
  0xad   : > { %v564_v21 = vpop.permute.xlu1 %563  ;;  %v562_v22 = vpop.permute.xlu0 %561  ;;  %1302 = vmatprep.subr.bf16.mxu1 %v1532_v3  ;;  %1308 = vmatprep.subr.bf16.mxu0 %v1532_v3 }
  0xae   : > { %v566_v23 = vsel %vm565_vm6, %v562_v22, %v564_v21 }
  0xaf   : > { %v571_v24 = vsel %vm369_vm2, %v566_v23, 0  ;;  %1293 = vmatmul.mubr.msk.bf16.vlgmr.msra.gmra.mxu1 %vm365_vm3, %v1227_v19  ;;  %1299 = vmatmul.mubr.msk.bf16.vlgmr.msra.gmra.mxu0 %vm365_vm3, %v1230_v20 }
  0xb0   : > { %1303 = vmatpush3.bf16.msra.mxu1 %v571_v24  ;;  %1304 = vmatprep.mubr.msk.bf16.mxu1 %vm1533_vm1, %v1532_v3 }
  0xb1   : > { %v631_v25 = vpop.permute.xlu1 %630  ;;  %v629_v26 = vpop.permute.xlu0 %628  ;;  %1310 = vmatprep.mubr.msk.bf16.mxu0 %vm1533_vm1, %v1532_v3  ;;  %1314 = vmatprep.subr.bf16.mxu1 %v1532_v3 }
  0xb2   : > { %v633_v27 = vsel %vm632_vm7, %v629_v26, %v631_v25 }
  0xb3   : > { %v638_v28 = vsel %vm369_vm2, %v633_v27, 0 }
  0xb4   : > { %1309 = vmatpush3.bf16.msra.mxu0 %v638_v28 }
  0xb5   : > { %v698_v31 = vpop.permute.xlu1 %697  ;;  %v696_v32 = vpop.permute.xlu0 %695  ;;  %1320 = vmatprep.subr.bf16.mxu0 %v1532_v3 }
  0xb6   : > { %v700_v33 = vsel %vm699_vm8, %v696_v32, %v698_v31 }
  0xb7   : > { %v705_v34 = vsel %vm369_vm2, %v700_v33, 0  ;;  %1305 = vmatmul.mubr.msk.bf16.vlgmr.msra.gmra.mxu1 %vm365_vm3, %v1233_v29  ;;  %1311 = vmatmul.mubr.msk.bf16.vlgmr.msra.gmra.mxu0 %vm365_vm3, %v1236_v30  ;;  %v1251_v33 = vld [vmem:[%s351_s26] ss:$0 sm:$0xff] }
  0xb8   : > { %1315 = vmatpush3.bf16.msra.mxu1 %v705_v34  ;;  %1316 = vmatprep.mubr.msk.bf16.mxu1 %vm1533_vm1, %v1532_v3 }
  0xb9   : > { %v765_v35 = vpop.permute.xlu1 %764  ;;  %v763_v36 = vpop.permute.xlu0 %762  ;;  %1322 = vmatprep.mubr.msk.bf16.mxu0 %vm1533_vm1, %v1532_v3  ;;  %1326 = vmatprep.subr.bf16.mxu1 %v1532_v3 }
  0xba   : > { %v767_v37 = vsel %vm766_vm9, %v763_v36, %v765_v35 }
  0xbb   : > { %v772_v38 = vsel %vm369_vm2, %v767_v37, 0  ;;  %v959_v37 = vld [vmem:[#allocation4] sm:$0xff] }
  0xbc   : > { %1321 = vmatpush3.bf16.msra.mxu0 %v772_v38 }
  0xbd   : > { %v832_v41 = vpop.permute.xlu1 %831  ;;  %v830_v42 = vpop.permute.xlu0 %829  ;;  %1332 = vmatprep.subr.bf16.mxu0 %v1532_v3 }
  0xbe   : > { %v834_v43 = vsel %vm833_vm10, %v830_v42, %v832_v41 }
  0xbf   : > { %v839_v44 = vsel %vm369_vm2, %v834_v43, 0  ;;  %1317 = vmatmul.mubr.msk.bf16.vlgmr.msra.gmra.mxu1 %vm365_vm3, %v1239_v39  ;;  %1323 = vmatmul.mubr.msk.bf16.vlgmr.msra.gmra.mxu0 %vm365_vm3, %v1242_v40 }
  0xc0   : > { %1327 = vmatpush3.bf16.msra.mxu1 %v839_v44  ;;  %1328 = vmatprep.mubr.msk.bf16.mxu1 %vm1533_vm1, %v1532_v3 }
  0xc1   : > { %v899_v45 = vpop.permute.xlu1 %898  ;;  %v897_v46 = vpop.permute.xlu0 %896  ;;  %1334 = vmatprep.mubr.msk.bf16.mxu0 %vm1533_vm1, %v1532_v3 }
  0xc2   : > { %v901_v47 = vsel %vm900_vm11, %v897_v46, %v899_v45 }
  0xc3   : > { %v906_v48 = vsel %vm369_vm2, %v901_v47, 0 }
  0xc4   : > { %1333 = vmatpush3.bf16.msra.mxu0 %v906_v48 }
  0xc7   : > { %1329 = vmatmul.mubr.msk.bf16.vlgmr.msra.gmra.mxu1 %vm365_vm3, %v1245_v49  ;;  %1335 = vmatmul.mubr.msk.bf16.vlgmr.msra.gmra.mxu0 %vm365_vm3, %v1248_v50 }
  0xce   : > { %v955_v24 = vpop.permute.xlu0 %954 }
  0xf8   : > { %v407_v51 = vpop.f32.mrf.mxu0 }
  0xfa   : > { %v1288_v52 = vpop.f32.mrf.mxu0 }
  0xfc   : > { %v410_v53 = vpop.f32.mrf.mxu0 }
  0xfe   : > { %v1289_v54 = vpop.f32.mrf.mxu0 }
 0x16f   : > { %v473_v55 = vpop.f32.mrf.mxu1  ;;  %v540_v56 = vpop.f32.mrf.mxu0 }
 0x170   : > { %v479_v63 = vadd.f32 %v473_v55, %v407_v51 }
 0x171   : > { %v1294_v57 = vpop.f32.mrf.mxu1  ;;  %v1300_v58 = vpop.f32.mrf.mxu0 }
 0x172   : > { %v546_v4 = vadd.f32 %v540_v56, %v479_v63 }
 0x173   : > { %v476_v59 = vpop.f32.mrf.mxu1  ;;  %v543_v60 = vpop.f32.mrf.mxu0 }
 0x175   : > { %v1295_v61 = vpop.f32.mrf.mxu1  ;;  %v1301_v62 = vpop.f32.mrf.mxu0 }
 0x177   : > { %v607_v0 = vpop.f32.mrf.mxu1  ;;  %v674_v1 = vpop.f32.mrf.mxu0 }
 0x178   : > { %v613_v7 = vadd.f32 %v607_v0, %v546_v4 }
 0x179   : > { %v1306_v2 = vpop.f32.mrf.mxu1  ;;  %v1312_v3 = vpop.f32.mrf.mxu0 }
 0x17a   : > { %v680_v12 = vadd.f32 %v674_v1, %v613_v7 }
 0x17b   : > { %v610_v5 = vpop.f32.mrf.mxu1  ;;  %v677_v6 = vpop.f32.mrf.mxu0 }
 0x17d   : > { %v1307_v8 = vpop.f32.mrf.mxu1  ;;  %v1313_v9 = vpop.f32.mrf.mxu0 }
 0x17f   : > { %v741_v10 = vpop.f32.mrf.mxu1  ;;  %v808_v11 = vpop.f32.mrf.mxu0 }
 0x180   : > { %v747_v15 = vadd.f32 %v741_v10, %v680_v12 }
 0x181   : > { %v1318_v13 = vpop.f32.mrf.mxu1  ;;  %v1324_v14 = vpop.f32.mrf.mxu0 }
 0x182   : > { %v814_v20 = vadd.f32 %v808_v11, %v747_v15 }
 0x183   : > { %v744_v16 = vpop.f32.mrf.mxu1  ;;  %v811_v17 = vpop.f32.mrf.mxu0 }
 0x185   : > { %v1319_v18 = vpop.f32.mrf.mxu1  ;;  %v1325_v19 = vpop.f32.mrf.mxu0 }
 0x187   : > { %v875_v21 = vpop.f32.mrf.mxu1  ;;  %v942_v22 = vpop.f32.mrf.mxu0 }
 0x188   : > { %v881_v23 = vadd.f32 %v875_v21, %v814_v20 }
 0x189   : > { %v1330_v25 = vpop.f32.mrf.mxu1  ;;  %v1336_v26 = vpop.f32.mrf.mxu0 }
 0x18a   : > { %v948_v27 = vadd.f32 %v942_v22, %v881_v23 }
 0x18b   : > { %v878_v28 = vpop.f32.mrf.mxu1  ;;  %v945_v29 = vpop.f32.mrf.mxu0 }
 0x18c   : > { %v957_v30 = vadd.f32 %v955_v24, %v948_v27 }
 0x18d   : > { %v1331_v31 = vpop.f32.mrf.mxu1  ;;  %v1337_v32 = vpop.f32.mrf.mxu0 }
 0x18e   : > { %v958_v34 = vmax.f32 %v957_v30, 0.0 }
 0x190   : > { %v974_v35 = vpack.c.bf16 %v958_v34, %v958_v34  ;;  %v967_v36 = vmul.f32 %v1251_v33, %v958_v34 }
 0x192   : > { %979 = vst [vmem:[%s978_s14] sm:$0xf] %v974_v35  ;;  %968 = vadd.xlane.f32.xlu1 %v967_v36 }
 0x21a   : > { %983 = sbr.rel (%p1254_p4) target bundleno = 909 (0x38d), region = 56 }
 0x21b   : > { %v969_v38 = vpop.xlane.xlu1 %968 }
 0x21c   : > { %v970_v39 = vadd.f32 %v969_v38, %v959_v37 }
 0x21e   : > { %972 = vst.msk [vmem:[#allocation4] sm:$0xff] %vm971_vm12, %v970_v39 }
 0x21f   : > { %v1543_v41 = vmov 0.0   ;;  %vm1544_vm13 = vmmov 0   ;;  %v986_v43 = vld [vmem:[%s1825_s4] sm:$0xff]  ;;  %vm988_vm14 = vcmask 64512   ;;  %v1545_v44 = vmov 0   ;;  %v1068_v53 = vld [vmem:[%s1678_s24] sm:$0xff] }
 0x220   : > { %1338 = vmatprep.subr.mxu0 %v1543_v41  ;;  %1340 = vmatprep.mubr.msk.f32.mxu0 %vm1544_vm13, %v1543_v41  ;;  %v987_v45 = vld [vmem:[%s1826_s5] sm:$0xff]  ;;  %v1070_v55 = vunpack.c.l.bf16 %v1068_v53  ;;  %v1071_v56 = vunpack.c.h.bf16 %v1068_v53 }
 0x221   : > { %1432 = vset.pattern.permute.xlu0 %v1545_v44  ;;  %v1069_v54 = vld [vmem:[%s1678_s24 + $0x8] sm:$0xf] }
 0x222   : > { %v1072_v57 = vunpack.c.l.bf16 %v1069_v54 }
 0x225   : > { %v984_v40 = vld [vmem:[#allocation4] sm:$0xff] }
 0x226   : > { %v985_v42 = vmul.f32 0.00390625, %v984_v40 }
 0x228   : > { %1339 = vmatpush3.msra.mxu0 %v985_v42 }
 0x229   : > { %1341 = vmatmul.mubr.msk.f32.vlgmr.msra.gmra.mxu0 %vm988_vm14, %v986_v43 }
 0x2e9   : > { %v1058_v46 = vpop.f32.mrf.mxu0 }
 0x2ea   : > { %v1059_v47 = vadd.f32 %v1058_v46, %v987_v45 }
 0x2eb   : > { %v1342_v48 = vpop.f32.mrf.mxu0 }
 0x2ec   : > { %v1256_v49 = vmul.f32 -1.442695, %v1059_v47 }
 0x2ee   : > { %1433 = vpow2.f32 %v1256_v49 }
 0x2fb   : > { %v1434_v50 = vpop.eup %1433 }
 0x2fc   : > { %v1065_v51 = vadd.f32 1.0, %v1434_v50 }
 0x2fe   : > { %1435 = vrcp.f32 %v1065_v51 }
 0x30b   : > { %v1436_v52 = vpop.eup %1435 }
 0x30c   : > { %1075 = vperm.xlu0 %1432, %v1436_v52  }
 0x387   : > { %v1076_v58 = vpop.permute.xlu0 %1075 }
 0x388   : > { %v1078_v59 = vmul.f32 %v1076_v58, %v1070_v55  ;;  %v1079_v60 = vmul.f32 %v1076_v58, %v1071_v56  ;;  %v1080_v61 = vmul.f32 %v1076_v58, %v1072_v57 }
 0x38a   : > { %v1262_v62 = vpack.c.bf16 %v1079_v60, %v1078_v59  ;;  %v1263_v63 = vpack.c.bf16 %v1080_v61, %v1080_v61 }
 0x38c   : > { %1094 = vst [vmem:[%s1678_s24] sm:$0xff] %v1262_v62  ;;  %1095 = vst [vmem:[%s1678_s24 + $0x8] sm:$0xf] %v1263_v63 }
 0x38d PF: > { %s1344_s18 = smul.u32 192, %s1517_s28  ;;  %s1111_s19 = sshll.u32 %s1678_s24, 4  ;;  %s1112_s19 = int_to_ptr.vmem [resolvable:$true] %s1111_s19 }
 0x38e   : > { %s1846_s10 = sand.u32 1, %s1505_s25   ;;  %s1437_s16 = scalar_lea.vmem %s1112_s19, 192 }
 0x38f   : > { %s1109_s9 = scalar_lea.hbm %s1828_s7, %s1344_s18  ;;  %s1097_s15 = scalar_lea.sflag [#allocation6], %s1846_s10 }
 0x390   : > { %p1438_p5 = scmp.ne.s32.totalorder %s1112_s19, %s1437_s16  ;;  %s1546_s20 = smov [#allocation5]  }
 0x391   : > { %s1441_s22 = sshll.u32 %s1546_s20, 4  ;;  %s1442_s22 = int_to_ptr.vmem [resolvable:$false] %s1441_s22 }
 0x392   : > { %p1439_p6 = pnand %p1438_p5, %p1636_p3  ;;  %s1443_s29 = scalar_lea.vmem %s1442_s22, 384 }
 0x393   : > { %p1444_p8 = scmp.lt.s32.totalorder %s1112_s19, %s1442_s22  ;;  %p1445_p10 = scmp.lt.s32.totalorder %s1443_s29, %s1437_s16 }
 0x394   : > { %p1440_p7 = pneg %p1439_p6 }
 0x395   : > { %p1446_p11 = por %p1445_p10, %p1444_p8 }
 0x397   : > { %p1447_p12 = pnand %p1446_p11, %p1440_p7 }
 0x399   : > { %1450 = shalt.err (!%p1447_p12)
}
 0x39a   : > { %s1451_s24 = scalar_lea.hbm %s1109_s9, 192  ;;  %s1455_s12 = scalar_lea.hbm %s1828_s7, 384 }
 0x39b   : > { %p1452_p13 = scmp.ne.s32.totalorder %s1109_s9, %s1451_s24  ;;  %p1456_p2 = scmp.lt.s32.totalorder %s1109_s9, %s1828_s7 }
 0x39c   : > { %p1457_p4 = scmp.lt.s32.totalorder %s1455_s12, %s1451_s24 }
 0x39d   : > { %p1453_p0 = pnand %p1452_p13, %p1636_p3 }
 0x39e   : > { %p1458_p5 = por %p1457_p4, %p1456_p2 }
 0x39f   : > { %p1454_p1 = pneg %p1453_p0 }
 0x3a1   : > { %p1459_p6 = pnand %p1458_p5, %p1454_p1 }
 0x3a3   : > { %1462 = shalt.err (!%p1459_p6)
}
 0x3a4   : > { %1345 = dma.vmem_to_hbm [thread:$0]  (%p1636_p3), %s1112_s19, 192, %s1109_s9, %s1097_s15  }
 0x3a5 PF: > { %s1847_s11 = sld [smem:[#allocation8_spill]]  ;;  %p1351_p7 = scmp.ge.s32.totalorder %s1529_s8, 2 }
 0x3a7   : > { %p1348_p8 = pnand %p1351_p7, %p1646_p9 }
 0x3a9   : > { %p1349_p10 = pneg %p1348_p8 }
 0x3ab   : > { %s1123_s27 = sand.u32 1, %s1847_s11  }
 0x3ac   : > { %s1124_s18 = scalar_lea.sflag [#allocation6], %s1123_s27 }
 0x3ad   : > { %1496 = dma.done.wait (%p1349_p10), %s1124_s18, 192  }
 0x3ae   : > { %1498 = vsyncadd (%p1349_p10), %s1124_s18, 4294967104  ;;  %s20_s8 = sadd.s32 1, %s1529_s8   ;;  %s1849_s21 = sld [smem:[#allocation9_spill]] }
 0x3af   : > { %p17_p11 = scmp.ge.s32.totalorder %s20_s8, 8   ;;  %s1850_s26 = sld [smem:[#allocation15_spill]] }
 0x3b0   : > { %s1851_s27 = sld [smem:[#allocation10_spill]]  ;;  %s1855_s24 = smov %s1505_s25 }
 0x3b1   : > { %s1852_s28 = sld [smem:[#allocation11_spill]]  ;;  %19 = sbr.rel (!%p17_p11) target bundleno = 5 (0x5), region = 106 }
 0x3b2   : > { %s1853_s29 = sld [smem:[#allocation12_spill]] }
 0x3b3   : > { %s1854_s30 = sld [smem:[#allocation13_spill]] }
 0x3b4   : > { %s1856_s25 = smov %s1849_s21 }
 0x3b6   :  { %1129 = vsyncpa [#allocation6], 1 }
 0x3b7   :  { %1131 = vsyncpa [#allocation6 + $0x1], 1 }

</bundles_post_ra>
